<compile_context>
chip_gen: v6e
topology: v6e:2x2x1
jax: 0.10.0
libtpu: 0.0.40
codegen_flags: <defaults>
</compile_context>

<pallas_src>
import math

import jax
import jax.numpy as jnp
from jax import lax
from jax.scipy.special import erf as _jax_erf
from jax.experimental import pallas as pl
from jax.experimental.pallas import tpu as pltpu

# ----------------- config (stands in for the `local` args object) -----------------
WAV_BAND = 2
EEG_BAND = 4
WAV_BAND_CHAN = 4
EEG_BAND_CHAN = 8
EEG_FS = 64
TIME_LEN = 1
BATCH = 2

WIN_LEN = TIME_LEN * EEG_FS              # 64
WINDOW_CP = WIN_LEN // 2                 # 32  (embed_dim of the attention)
OFC = WAV_BAND * EEG_BAND                # 8   (band-MLP output columns)
SCALE_DIM = 32
NUM_HEADS = 1
HEAD_DIM = SCALE_DIM // NUM_HEADS
SCALING = HEAD_DIM ** (-0.5)
INV_DENOM = float((WAV_BAND * EEG_BAND) ** (-0.25))   # 1/(src*tgt)**0.25, both attns

CHANNEL_NUM = [WAV_BAND, EEG_BAND, WAV_BAND]
CHANNEL_ORIGIN = [WAV_BAND_CHAN, EEG_BAND_CHAN, WAV_BAND_CHAN]

XCOLS = 2 * WAV_BAND * WAV_BAND_CHAN + EEG_BAND * EEG_BAND_CHAN   # 48
NQ = 2 * WAV_BAND                  # 4   q "target" columns: [A0, A1, B0, B1]
PROJ_ROWS = 4 * SCALE_DIM          # 128 rows = [wq0; wq1; wk0; wk1] per batch block
C_PBIAS = BATCH * WINDOW_CP        # 64  lane holding the projection bias column

# ---- packed weight-slab row offsets (all multiples of 8) ----
R_W1BD = 0                              # (48, 48) block-diag band-MLP layer 1
R_B1 = 48                               # (1, 48)
R_W2BD = 56                             # (48, 8)  block-diag band-MLP layer 2
R_B2 = 104                              # (1, 8)
R_WP = 112                              # (256, 64) batch-block-diag q/k projections (+bias @ col 64)
R_QMASK = R_WP + BATCH * PROJ_ROWS      # 368: (64, 4) q block-diag validity mask
R_W1FC = R_QMASK + 2 * SCALE_DIM        # 432: (16, 8) output_fc layer 1 (pre-transposed)
R_B1FC = R_W1FC + 16                    # 448
R_W2FC = R_B1FC + 8                     # 456: (8, 2) output_fc layer 2 (pre-transposed)
R_B2FC = R_W2FC + 8                     # 464
SLAB_ROWS = R_B2FC + 8                  # 472
SLAB_COLS = 128

_VMEM = pltpu.MemorySpace.VMEM


# ----------------- in-kernel helpers -----------------
def _gelu_tanh(x):
    # tanh-form GELU (|err| vs torch's exact erf GELU < 3.2e-4, far inside tolerance).
    # jnp.tanh lowers to the EUP, keeping the VALU slots free.
    c0 = 0.7978845608028654      # sqrt(2/pi)
    c1 = 0.044715
    return 0.5 * x * (1.0 + jnp.tanh(c0 * (x + c1 * x * x * x)))


# ----------------- the single fused kernel -----------------
def _fused_kernel(x_ref, w_ref, o_ref):
    f32 = jnp.float32

    # ---- 8 per-band channel MLPs as ONE block-diagonal Linear -> GELU -> Linear ----
    x = x_ref[...]                                                    # (B*W, 48)
    w1 = w_ref[R_W1BD:R_W1BD + XCOLS, 0:XCOLS]
    b1 = w_ref[R_B1:R_B1 + 1, 0:XCOLS]
    h = jnp.dot(x, w1, preferred_element_type=f32) + b1
    h = _gelu_tanh(h)
    w2 = w_ref[R_W2BD:R_W2BD + XCOLS, 0:OFC]
    b2 = w_ref[R_B2:R_B2 + 1, 0:OFC]
    y = jnp.dot(h, w2, preferred_element_type=f32) + b2               # (B*W, 8) = [A0 A1 B0 B1 E0..E3]

    # ---- all q/k projections (2 attns x 2 batches) in ONE matmul ----
    # wp is block-diagonal over batch, so rows b*128:(b+1)*128 only see y rows of batch b.
    wp = w_ref[R_WP:R_WP + BATCH * PROJ_ROWS, 0:BATCH * WINDOW_CP]    # (256, 64)
    bp = w_ref[R_WP:R_WP + BATCH * PROJ_ROWS, C_PBIAS:C_PBIAS + 1]    # (256, 1)
    p = jnp.dot(wp, y, preferred_element_type=f32) + bp               # (256, 8)

    qmask = w_ref[R_QMASK:R_QMASK + 2 * SCALE_DIM, 0:NQ]              # (64, 4)
    w1fc = w_ref[R_W1FC:R_W1FC + 2 * OFC, 0:OFC]                      # (16, 8)
    b1fc = w_ref[R_B1FC:R_B1FC + 1, 0:OFC]
    w2fc = w_ref[R_W2FC:R_W2FC + OFC, 0:2]                            # (8, 2)
    b2fc = w_ref[R_B2FC:R_B2FC + 1, 0:2]

    tn = (((0,), (0,)), ((), ()))    # contract dim 0 of both operands (Q^T K)
    rows = []
    for b in range(BATCH):           # static unroll, tiny batch
        pb = p[b * PROJ_ROWS:(b + 1) * PROJ_ROWS, :]
        # rows [q0; q1]; the mask keeps only the valid (q0, A-cols) / (q1, B-cols) blocks.
        q = pb[0:2 * SCALE_DIM, 0:NQ] * qmask                         # (64, 4)
        k = pb[2 * SCALE_DIM:4 * SCALE_DIM, NQ:NQ + EEG_BAND]         # (64, 4) = [k0; k1]
        r = lax.dot_general(q, k, tn, preferred_element_type=f32)     # (4, 4): rows = [attn0 t0,t1, attn1 t0,t1]
        # flatten (attn-major, tgt-major, src-minor) == torch .view(batch,-1) + cat order
        rows.append(jnp.concatenate([r[t:t + 1, :] for t in range(NQ)], axis=1))
    data_dot = jnp.concatenate(rows, axis=0)                          # (B, 16)

    # ---- output_fc: Linear -> ReLU -> Linear -> Sigmoid ----
    hfc = jnp.maximum(jnp.dot(data_dot, w1fc, preferred_element_type=f32) + b1fc, 0.0)
    out = jnp.dot(hfc, w2fc, preferred_element_type=f32) + b2fc
    o_ref[...] = 1.0 / (1.0 + jnp.exp(-out))                          # exp -> EUP; divide on 4 values


# ----------------- forward (host glue: FFT + one fused pallas_call) -----------------
@jax.jit
def forward(w_slab, bs1, bs2, beeg, targets):
    # NOTE: BATCH and WINDOW_CP are baked into the packed weights and the kernel loop.
    if bs1.shape[0] != BATCH:
        raise ValueError(f"forward() is specialized for batch={BATCH}, got {bs1.shape[0]}")

    def prep(x):
        xt = jnp.swapaxes(x, -1, -2).astype(jnp.float32)              # (B, T, C)
        # real input: rfft bins 0..T/2 equal the first half of the full FFT
        return jnp.abs(jnp.fft.rfft(xt, axis=1))[:, :WINDOW_CP, :]

    # one lane-denser input slab: columns = [wavA(8) | wavB(8) | eeg(32)]
    x = jnp.concatenate([prep(bs1), prep(bs2), prep(beeg)], axis=2)   # (B, W, 48)
    x = x.reshape(BATCH * WINDOW_CP, XCOLS).astype(jnp.float32)

    vmem = pl.BlockSpec(memory_space=_VMEM)
    out = pl.pallas_call(
        _fused_kernel,
        out_shape=jax.ShapeDtypeStruct((BATCH, 2), jnp.float32),
        in_specs=[vmem, vmem],
        out_specs=vmem,
        cost_estimate=pl.CostEstimate(
            flops=650_000, transcendentals=3_100, bytes_accessed=260_000),
    )(x, w_slab)
    return out, targets, []


# ----------------- one-time parameter preparation -----------------
def prepare_params(params):
    """Torch-layout params -> ONE kernel-ready packed f32 slab of shape (SLAB_ROWS, 128)."""
    slab = jnp.zeros((SLAB_ROWS, SLAB_COLS), jnp.float32)

    # --- band MLPs, block-diagonal, band order [A0, A1, B0, B1, E0..E3] ---
    ec = params["eeg_change"]
    band_params = list(ec[0]) + list(ec[2]) + list(ec[1])
    w1bd = jnp.zeros((XCOLS, XCOLS), jnp.float32)
    w2bd = jnp.zeros((XCOLS, OFC), jnp.float32)
    b1_parts, b2_parts = [], []
    off = 0
    for i, p in enumerate(band_params):
        c = p["w1"].shape[0]
        w1bd = w1bd.at[off:off + c, off:off + c].set(jnp.asarray(p["w1"], jnp.float32).T)
        w2bd = w2bd.at[off:off + c, i].set(jnp.asarray(p["w2"], jnp.float32)[0, :])
        b1_parts.append(jnp.asarray(p["b1"], jnp.float32))
        b2_parts.append(jnp.asarray(p["b2"], jnp.float32))
        off += c
    slab = slab.at[R_W1BD:R_W1BD + XCOLS, 0:XCOLS].set(w1bd)
    slab = slab.at[R_B1, 0:XCOLS].set(jnp.concatenate(b1_parts))
    slab = slab.at[R_W2BD:R_W2BD + XCOLS, 0:OFC].set(w2bd)
    slab = slab.at[R_B2, 0:OFC].set(jnp.concatenate(b2_parts))

    # --- attention projections: [wq0; wq1; wk0; wk1], batch-block-diagonal ---
    # head_dim**-0.5 folded into q, (src*tgt)**-0.25 folded into k.
    def qk(p, qs, ks):
        W = jnp.asarray(p["in_proj_weight"], jnp.float32)
        b = jnp.asarray(p["in_proj_bias"], jnp.float32)
        return (qs * W[0:SCALE_DIM, :], qs * b[0:SCALE_DIM],
                ks * W[SCALE_DIM:2 * SCALE_DIM, :], ks * b[SCALE_DIM:2 * SCALE_DIM])

    wq0, bq0, wk0, bk0 = qk(params["cm_attn"][0], SCALING, INV_DENOM)   # query wavA, key eeg
    wq1, bq1, wk1, bk1 = qk(params["cm_attn"][3], SCALING, INV_DENOM)   # query wavB, key eeg
    w_stack = jnp.concatenate([wq0, wq1, wk0, wk1], axis=0)             # (128, 32)
    b_stack = jnp.concatenate([bq0, bq1, bk0, bk1], axis=0)             # (128,)
    for b in range(BATCH):
        r0 = R_WP + b * PROJ_ROWS
        slab = slab.at[r0:r0 + PROJ_ROWS, b * WINDOW_CP:(b + 1) * WINDOW_CP].set(w_stack)
        slab = slab.at[r0:r0 + PROJ_ROWS, C_PBIAS].set(b_stack)

    # --- q validity mask: keep (q0, A-cols) and (q1, B-cols) blocks only ---
    qmask = jnp.zeros((2 * SCALE_DIM, NQ), jnp.float32)
    qmask = qmask.at[0:SCALE_DIM, 0:WAV_BAND].set(1.0)
    qmask = qmask.at[SCALE_DIM:2 * SCALE_DIM, WAV_BAND:NQ].set(1.0)
    slab = slab.at[R_QMASK:R_QMASK + 2 * SCALE_DIM, 0:NQ].set(qmask)

    # --- output_fc (pre-transposed) ---
    fc = params["output_fc"]
    slab = slab.at[R_W1FC:R_W1FC + 2 * OFC, 0:OFC].set(jnp.asarray(fc["w1"], jnp.float32).T)
    slab = slab.at[R_B1FC, 0:OFC].set(jnp.asarray(fc["b1"], jnp.float32))
    slab = slab.at[R_W2FC:R_W2FC + OFC, 0:2].set(jnp.asarray(fc["w2"], jnp.float32).T)
    slab = slab.at[R_B2FC, 0:2].set(jnp.asarray(fc["b2"], jnp.float32))
    return jax.device_put(slab)


# ----------------- deterministic parameter init (torch layout) -----------------
def init_params(key):
    keys = iter(jax.random.split(key, 64))
    nk = lambda: next(keys)
    params = {"eeg_change": [], "cm_attn": [], "output_fc": None}
    for index in range(3):
        row = []
        c = CHANNEL_ORIGIN[index]
        for _ in range(CHANNEL_NUM[index]):
            row.append({
                "w1": 0.1 * jax.random.normal(nk(), (c, c), jnp.float32),
                "b1": 0.01 * jax.random.normal(nk(), (c,), jnp.float32),
                "w2": 0.1 * jax.random.normal(nk(), (1, c), jnp.float32),
                "b2": 0.01 * jax.random.normal(nk(), (1,), jnp.float32),
            })
        params["eeg_change"].append(row)
    for _ in range(4):
        params["cm_attn"].append({
            "in_proj_weight": 0.1 * jax.random.normal(nk(), (3 * SCALE_DIM, WINDOW_CP), jnp.float32),
            "in_proj_bias": 0.01 * jax.random.normal(nk(), (3 * SCALE_DIM,), jnp.float32),
        })
    params["output_fc"] = {
        "w1": 0.1 * jax.random.normal(nk(), (OFC, 2 * OFC), jnp.float32),
        "b1": 0.01 * jax.random.normal(nk(), (OFC,), jnp.float32),
        "w2": 0.1 * jax.random.normal(nk(), (2, OFC), jnp.float32),
        "b2": 0.01 * jax.random.normal(nk(), (2,), jnp.float32),
    }
    return params


# ----------------- pure-JAX reference (faithful to the torch forward) -----------------
def reference_forward(params, bs1, bs2, beeg):
    def prep(x):
        xt = jnp.swapaxes(x, -1, -2)
        xf = jnp.abs(jnp.fft.fft(xt, axis=1))        # full complex FFT, like torch
        return xf[:, :WINDOW_CP, :].astype(jnp.float32)

    split = [prep(bs1), prep(beeg), prep(bs2)]
    for index in range(3):
        nb = CHANNEL_NUM[index]
        c = split[index].shape[2] // nb
        bands = []
        for i in range(nb):
            xi = split[index][:, :, i * c:(i + 1) * c]
            p = params["eeg_change"][index][i]
            h = xi @ p["w1"].T + p["b1"]
            h = 0.5 * h * (1.0 + _jax_erf(h / math.sqrt(2.0)))    # exact erf GELU (torch)
            bands.append(h @ p["w2"].T + p["b2"])
        split[index] = jnp.concatenate(bands, axis=2)

    wavA, eeg, wavB = split
    data = [wavA, eeg, eeg, wavB]
    kv = [eeg, wavA, wavB, eeg]
    dd = []
    for j in range(2):
        i = j * 3
        q_in = jnp.transpose(data[i], (2, 0, 1))      # (tgt, B, W)
        k_in = jnp.transpose(kv[i], (2, 0, 1))        # (src, B, W)
        p = params["cm_attn"][i]
        Wq = p["in_proj_weight"][0:SCALE_DIM]; bq = p["in_proj_bias"][0:SCALE_DIM]
        Wk = p["in_proj_weight"][SCALE_DIM:2 * SCALE_DIM]
        bk = p["in_proj_bias"][SCALE_DIM:2 * SCALE_DIM]
        q = (q_in @ Wq.T + bq) * SCALING              # (tgt, B, 32)
        k = k_in @ Wk.T + bk                          # (src, B, 32)
        q = jnp.transpose(q, (1, 0, 2))               # (B, tgt, 32)
        k = jnp.transpose(k, (1, 0, 2))               # (B, src, 32)
        attn = jnp.einsum("btd,bsd->bts", q, k)
        attn = attn / float((k.shape[1] * q.shape[1]) ** 0.25)
        dd.append(attn.reshape(attn.shape[0], -1))
    data_dot = jnp.concatenate(dd, axis=1)

    p = params["output_fc"]
    h = jnp.maximum(data_dot @ p["w1"].T + p["b1"], 0.0)
    y = h @ p["w2"].T + p["b2"]
    return 1.0 / (1.0 + jnp.exp(-y))


if __name__ == "__main__":
    key = jax.random.PRNGKey(0)
    kp, k1, k2, k3 = jax.random.split(key, 4)
    params = init_params(kp)
    w_slab = prepare_params(params)

    bs1 = jax.random.normal(k1, (BATCH, WAV_BAND * WAV_BAND_CHAN, WIN_LEN), jnp.float32)
    bs2 = jax.random.normal(k2, (BATCH, WAV_BAND * WAV_BAND_CHAN, WIN_LEN), jnp.float32)
    beeg = jax.random.normal(k3, (BATCH, EEG_BAND * EEG_BAND_CHAN, WIN_LEN), jnp.float32)
    targets = jnp.zeros((BATCH,), jnp.int32)

    out, tgt, vis = forward(w_slab, bs1, bs2, beeg, targets)
    out = jax.block_until_ready(out)
    assert out.shape == (BATCH, 2)
    assert tgt.shape == (BATCH,)

    # NOTE: kernel uses tanh-GELU (|err| < 3.2e-4 vs torch's exact erf GELU); the small
    # weights here contract that error to ~1e-5 at the output, well inside 2e-3.
    ref = reference_forward(params, bs1, bs2, beeg)
    assert jnp.allclose(out, ref, rtol=2e-3, atol=2e-3), (out, ref)
    print("KERNEL_OK")
</pallas_src>

<mosaic_0001>
module attributes {stable_mosaic.version = 11 : i64} {
  func.func @_fused_kernel(%arg0: memref<64x48xf32, #tpu.memory_space<vmem>>, %arg1: memref<472x128xf32, #tpu.memory_space<vmem>>, %arg2: memref<2x2xf32, #tpu.memory_space<vmem>>) attributes {dimension_semantics = [], scalar_prefetch = 0 : i64, scratch_operands = 0 : i64, tpu.core_type = #tpu.core_type<tc>} {
    %c0 = arith.constant 0 : index
    %c0_0 = arith.constant 0 : index
    %0 = vector.load %arg0[%c0, %c0_0] : memref<64x48xf32, #tpu.memory_space<vmem>>, vector<64x48xf32>
    %c0_1 = arith.constant 0 : index
    %c0_2 = arith.constant 0 : index
    %1 = vector.load %arg1[%c0_1, %c0_2] : memref<472x128xf32, #tpu.memory_space<vmem>>, vector<48x48xf32>
    %c48 = arith.constant 48 : index
    %c0_3 = arith.constant 0 : index
    %2 = vector.load %arg1[%c48, %c0_3] : memref<472x128xf32, #tpu.memory_space<vmem>>, vector<1x48xf32>
    %cst = arith.constant dense<0.000000e+00> : vector<64x48xf32>
    %3 = tpu.matmul %0, %1, %cst {dimension_numbers = #tpu.dot_dimension_numbers<[1], [0], [0], [1], [0, 0, 1, 1], [], []>} : vector<64x48xf32>, vector<48x48xf32>, vector<64x48xf32> -> vector<64x48xf32>
    %4 = vector.broadcast %2 : vector<1x48xf32> to vector<64x48xf32>
    %5 = arith.addf %3, %4 : vector<64x48xf32>
    %cst_4 = arith.constant 5.000000e-01 : f32
    %6 = vector.broadcast %cst_4 : f32 to vector<64x48xf32>
    %7 = arith.mulf %6, %5 : vector<64x48xf32>
    %cst_5 = arith.constant 4.471500e-02 : f32
    %8 = vector.broadcast %cst_5 : f32 to vector<64x48xf32>
    %9 = arith.mulf %8, %5 : vector<64x48xf32>
    %10 = arith.mulf %9, %5 : vector<64x48xf32>
    %11 = arith.mulf %10, %5 : vector<64x48xf32>
    %12 = arith.addf %5, %11 : vector<64x48xf32>
    %cst_6 = arith.constant 0.797884583 : f32
    %13 = vector.broadcast %cst_6 : f32 to vector<64x48xf32>
    %14 = arith.mulf %13, %12 : vector<64x48xf32>
    %15 = math.tanh %14 : vector<64x48xf32>
    %cst_7 = arith.constant 1.000000e+00 : f32
    %16 = vector.broadcast %cst_7 : f32 to vector<64x48xf32>
    %17 = arith.addf %16, %15 : vector<64x48xf32>
    %18 = arith.mulf %7, %17 : vector<64x48xf32>
    %c56 = arith.constant 56 : index
    %c0_8 = arith.constant 0 : index
    %19 = vector.load %arg1[%c56, %c0_8] : memref<472x128xf32, #tpu.memory_space<vmem>>, vector<48x8xf32>
    %c104 = arith.constant 104 : index
    %c0_9 = arith.constant 0 : index
    %20 = vector.load %arg1[%c104, %c0_9] : memref<472x128xf32, #tpu.memory_space<vmem>>, vector<1x8xf32>
    %cst_10 = arith.constant dense<0.000000e+00> : vector<64x8xf32>
    %21 = tpu.matmul %18, %19, %cst_10 {dimension_numbers = #tpu.dot_dimension_numbers<[1], [0], [0], [1], [0, 0, 1, 1], [], []>} : vector<64x48xf32>, vector<48x8xf32>, vector<64x8xf32> -> vector<64x8xf32>
    %22 = vector.broadcast %20 : vector<1x8xf32> to vector<64x8xf32>
    %23 = arith.addf %21, %22 : vector<64x8xf32>
    %c112 = arith.constant 112 : index
    %c0_11 = arith.constant 0 : index
    %24 = vector.load %arg1[%c112, %c0_11] : memref<472x128xf32, #tpu.memory_space<vmem>>, vector<256x64xf32>
    %c112_12 = arith.constant 112 : index
    %c64 = arith.constant 64 : index
    %25 = vector.load %arg1[%c112_12, %c64] : memref<472x128xf32, #tpu.memory_space<vmem>>, vector<256x1xf32>
    %cst_13 = arith.constant dense<0.000000e+00> : vector<256x8xf32>
    %26 = tpu.matmul %24, %23, %cst_13 {dimension_numbers = #tpu.dot_dimension_numbers<[1], [0], [0], [1], [0, 0, 1, 1], [], []>} : vector<256x64xf32>, vector<64x8xf32>, vector<256x8xf32> -> vector<256x8xf32>
    %27 = vector.broadcast %25 : vector<256x1xf32> to vector<256x8xf32>
    %28 = arith.addf %26, %27 : vector<256x8xf32>
    %c368 = arith.constant 368 : index
    %c0_14 = arith.constant 0 : index
    %29 = vector.load %arg1[%c368, %c0_14] : memref<472x128xf32, #tpu.memory_space<vmem>>, vector<64x4xf32>
    %c432 = arith.constant 432 : index
    %c0_15 = arith.constant 0 : index
    %30 = vector.load %arg1[%c432, %c0_15] : memref<472x128xf32, #tpu.memory_space<vmem>>, vector<16x8xf32>
    %c448 = arith.constant 448 : index
    %c0_16 = arith.constant 0 : index
    %31 = vector.load %arg1[%c448, %c0_16] : memref<472x128xf32, #tpu.memory_space<vmem>>, vector<1x8xf32>
    %c456 = arith.constant 456 : index
    %c0_17 = arith.constant 0 : index
    %32 = vector.load %arg1[%c456, %c0_17] : memref<472x128xf32, #tpu.memory_space<vmem>>, vector<8x2xf32>
    %c464 = arith.constant 464 : index
    %c0_18 = arith.constant 0 : index
    %33 = vector.load %arg1[%c464, %c0_18] : memref<472x128xf32, #tpu.memory_space<vmem>>, vector<1x2xf32>
    %34 = vector.extract_strided_slice %28 {offsets = [0, 0], sizes = [128, 8], strides = [1, 1]} : vector<256x8xf32> to vector<128x8xf32>
    %35 = vector.extract_strided_slice %34 {offsets = [0, 0], sizes = [64, 4], strides = [1, 1]} : vector<128x8xf32> to vector<64x4xf32>
    %36 = arith.mulf %35, %29 : vector<64x4xf32>
    %37 = vector.extract_strided_slice %34 {offsets = [64, 4], sizes = [64, 4], strides = [1, 1]} : vector<128x8xf32> to vector<64x4xf32>
    %cst_19 = arith.constant dense<0.000000e+00> : vector<4x4xf32>
    %38 = tpu.matmul %36, %37, %cst_19 {dimension_numbers = #tpu.dot_dimension_numbers<[0], [0], [1], [1], [0, 1, 1, 1], [], []>} : vector<64x4xf32>, vector<64x4xf32>, vector<4x4xf32> -> vector<4x4xf32>
    %39 = vector.extract_strided_slice %38 {offsets = [0, 0], sizes = [1, 4], strides = [1, 1]} : vector<4x4xf32> to vector<1x4xf32>
    %40 = vector.extract_strided_slice %38 {offsets = [1, 0], sizes = [1, 4], strides = [1, 1]} : vector<4x4xf32> to vector<1x4xf32>
    %41 = vector.extract_strided_slice %38 {offsets = [2, 0], sizes = [1, 4], strides = [1, 1]} : vector<4x4xf32> to vector<1x4xf32>
    %42 = vector.extract_strided_slice %38 {offsets = [3, 0], sizes = [1, 4], strides = [1, 1]} : vector<4x4xf32> to vector<1x4xf32>
    %43 = tpu.concatenate %39, %40, %41, %42 in 1 : vector<1x4xf32>, vector<1x4xf32>, vector<1x4xf32>, vector<1x4xf32> -> vector<1x16xf32>
    %44 = vector.extract_strided_slice %28 {offsets = [128, 0], sizes = [128, 8], strides = [1, 1]} : vector<256x8xf32> to vector<128x8xf32>
    %45 = vector.extract_strided_slice %44 {offsets = [0, 0], sizes = [64, 4], strides = [1, 1]} : vector<128x8xf32> to vector<64x4xf32>
    %46 = arith.mulf %45, %29 : vector<64x4xf32>
    %47 = vector.extract_strided_slice %44 {offsets = [64, 4], sizes = [64, 4], strides = [1, 1]} : vector<128x8xf32> to vector<64x4xf32>
    %cst_20 = arith.constant dense<0.000000e+00> : vector<4x4xf32>
    %48 = tpu.matmul %46, %47, %cst_20 {dimension_numbers = #tpu.dot_dimension_numbers<[0], [0], [1], [1], [0, 1, 1, 1], [], []>} : vector<64x4xf32>, vector<64x4xf32>, vector<4x4xf32> -> vector<4x4xf32>
    %49 = vector.extract_strided_slice %48 {offsets = [0, 0], sizes = [1, 4], strides = [1, 1]} : vector<4x4xf32> to vector<1x4xf32>
    %50 = vector.extract_strided_slice %48 {offsets = [1, 0], sizes = [1, 4], strides = [1, 1]} : vector<4x4xf32> to vector<1x4xf32>
    %51 = vector.extract_strided_slice %48 {offsets = [2, 0], sizes = [1, 4], strides = [1, 1]} : vector<4x4xf32> to vector<1x4xf32>
    %52 = vector.extract_strided_slice %48 {offsets = [3, 0], sizes = [1, 4], strides = [1, 1]} : vector<4x4xf32> to vector<1x4xf32>
    %53 = tpu.concatenate %49, %50, %51, %52 in 1 : vector<1x4xf32>, vector<1x4xf32>, vector<1x4xf32>, vector<1x4xf32> -> vector<1x16xf32>
    %54 = tpu.concatenate %43, %53 in 0 : vector<1x16xf32>, vector<1x16xf32> -> vector<2x16xf32>
    %cst_21 = arith.constant dense<0.000000e+00> : vector<2x8xf32>
    %55 = tpu.matmul %54, %30, %cst_21 {dimension_numbers = #tpu.dot_dimension_numbers<[1], [0], [0], [1], [0, 0, 1, 1], [], []>} : vector<2x16xf32>, vector<16x8xf32>, vector<2x8xf32> -> vector<2x8xf32>
    %56 = vector.broadcast %31 : vector<1x8xf32> to vector<2x8xf32>
    %57 = arith.addf %55, %56 : vector<2x8xf32>
    %cst_22 = arith.constant 0.000000e+00 : f32
    %58 = vector.broadcast %cst_22 : f32 to vector<2x8xf32>
    %59 = arith.maximumf %57, %58 : vector<2x8xf32>
    %cst_23 = arith.constant dense<0.000000e+00> : vector<2x2xf32>
    %60 = tpu.matmul %59, %32, %cst_23 {dimension_numbers = #tpu.dot_dimension_numbers<[1], [0], [0], [1], [0, 0, 1, 1], [], []>} : vector<2x8xf32>, vector<8x2xf32>, vector<2x2xf32> -> vector<2x2xf32>
    %61 = vector.broadcast %33 : vector<1x2xf32> to vector<2x2xf32>
    %62 = arith.addf %60, %61 : vector<2x2xf32>
    %cst_24 = arith.constant 0.000000e+00 : f32
    %63 = vector.broadcast %cst_24 : f32 to vector<2x2xf32>
    %64 = arith.subf %63, %62 : vector<2x2xf32>
    %65 = math.exp %64 : vector<2x2xf32>
    %cst_25 = arith.constant 1.000000e+00 : f32
    %66 = vector.broadcast %cst_25 : f32 to vector<2x2xf32>
    %67 = arith.addf %66, %65 : vector<2x2xf32>
    %cst_26 = arith.constant 1.000000e+00 : f32
    %68 = vector.broadcast %cst_26 : f32 to vector<2x2xf32>
    %69 = arith.divf %68, %67 : vector<2x2xf32>
    %c0_27 = arith.constant 0 : index
    %c0_28 = arith.constant 0 : index
    %70 = vector.load %arg2[%c0_27, %c0_28] : memref<2x2xf32, #tpu.memory_space<vmem>>, vector<2x2xf32>
    tpu.vector_store %arg2[%c0_27, %c0_28], %69 {strides = array<i32>} : memref<2x2xf32, #tpu.memory_space<vmem>>, vector<2x2xf32>,
    return
  }
}

</mosaic_0001>

<bundles_post_ra>
// kernel: forward.1
= control target key start
LH: loop header
LB: loop body
LE: loop exit
PB: predicated region body
PF: predicated region fallthrough
CT: control target
= control target key end

     0   :  { %vm31_vm0 = vcmask 392192   ;;  %s2254_s0 = inlined_call_operand.vmem [shape: f32[64,48], index: 0, kind: input, shape index: {}]   ;;  %s2255_s1 = inlined_call_operand.vmem [shape: f32[472,128], index: 1, kind: input, shape index: {}]   ;;  %s2256_s2 = inlined_call_operand.hbm [shape: f32[2,2], index: 2, kind: output, shape index: {}]  }
   0x1   :  { %v25_v0 = vld [vmem:[%s2255_s1 + $0x28] sm:$0xff]  ;;  %v24_v1 = vld [vmem:[%s2255_s1 + $0x20] sm:$0xff]  ;;  %v23_v2 = vld [vmem:[%s2255_s1 + $0x18] sm:$0xff] }
   0x2   :  { %1523 = vmatprep.subr.mxu0 %v25_v0  ;;  %v12_v3 = vld [vmem:[%s2254_s0] sm:$0xff]  ;;  %v22_v4 = vld [vmem:[%s2255_s1 + $0x10] sm:$0xff] }
   0x3   :  { %1524 = vmatpush3.msra.mxu0 %v25_v0  ;;  %1535 = vmatprep.mubr.msk.f32.mxu0 %vm31_vm0, %v12_v3 }
   0x4   :  { %1525 = vmatprep.subr.mxu0 %v24_v1 }
   0x5   :  { %1526 = vmatpush3.msra.mxu0 %v24_v1 }
   0x6   :  { %7 = vsyncpa [#allocation3], 0  ;;  %1527 = vmatprep.subr.mxu0 %v23_v2  ;;  %v21_v5 = vld [vmem:[%s2255_s1 + $0x8] sm:$0xff]  ;;  %v20_v6 = vld [vmem:[%s2255_s1] sm:$0xff]  ;;  %vm565_vm1 = vcmask 523264   ;;  %s1754_s30 = smov 124  }
   0x7   :  { %1528 = vmatpush3.msra.mxu0 %v23_v2  ;;  %v13_v7 = vld [vmem:[%s2254_s0 + $0x8] sm:$0xff]  ;;  %v14_v8 = vld [vmem:[%s2254_s0 + $0x10] sm:$0xff]  ;;  %v15_v9 = vld [vmem:[%s2254_s0 + $0x18] sm:$0xff]  ;;  %vm1756_vm2 = vmmov 0   ;;  %s1757_s18 = smov 4   ;;  %s1758_s23 = smov 8  }
   0x8   :  { %1529 = vmatprep.subr.mxu0 %v22_v4  ;;  %v16_v10 = vld [vmem:[%s2254_s0 + $0x20] sm:$0xff]  ;;  %v17_v11 = vld [vmem:[%s2254_s0 + $0x28] sm:$0xff]  ;;  %v18_v12 = vld [vmem:[%s2254_s0 + $0x30] sm:$0xff]  ;;  %s1759_s24 = smov 12   ;;  %vm1026_vm3 = vcmask 31744   ;;  %vm1028_vm4 = vcmask 64512  }
   0x9   :  { %1530 = vmatpush3.msra.mxu0 %v22_v4  ;;  %v19_v13 = vld [vmem:[%s2254_s0 + $0x38] sm:$0xff]  ;;  %v238_v14 = vld [vmem:[%s2255_s1 + $0x60] sm:$0xff]  ;;  %v236_v16 = vld [vmem:[%s2255_s1 + $0x50] sm:$0xff]  ;;  %vm1030_vm5 = vcmask 97280   ;;  %vm1196_vm6 = vcmask 1040384   ;;  %vm1202_vm7 = vcmask 130048  }
   0xa   :  { %1531 = vmatprep.subr.mxu0 %v21_v5  ;;  %1547 = vmatprep.subr.mxu1 %v238_v14  ;;  %v237_v15 = vld [vmem:[%s2255_s1 + $0x58] sm:$0xff]  ;;  %v235_v17 = vld [vmem:[%s2255_s1 + $0x48] sm:$0xff]  ;;  %v234_v18 = vld [vmem:[%s2255_s1 + $0x40] sm:$0xff]  ;;  %s1760_s3 = smov [#allocation2]   ;;  %vm1360_vm8 = vcmask 9216  }
   0xb   :  { %1532 = vmatpush3.msra.mxu0 %v21_v5  ;;  %1548 = vmatpush3.msra.mxu1 %v238_v14  ;;  %v233_v19 = vld [vmem:[%s2255_s1 + $0x38] sm:$0xff]  ;;  %v1376_v20 = vld [vmem:[%s2255_s1 + $0x30] ss:$0 sm:$0xff]  ;;  %s1368_s4 = sshll.u32 %s1760_s3, 4  ;;  %s1369_s4 = int_to_ptr.vmem [resolvable:$true] %s1368_s4 }
   0xc   :  { %1533 = vmatprep.subr.mxu0 %v20_v6  ;;  %1549 = vmatprep.subr.mxu1 %v237_v15  ;;  %s1731_s5 = scalar_lea.vmem %s1369_s4, 32  ;;  %p1736_p1 = scmp.lt.s32.totalorder %s1369_s4, %s1369_s4 }
   0xd   :  { %1534 = vmatpush3.msra.mxu0 %v20_v6  ;;  %1550 = vmatpush3.msra.mxu1 %v237_v15  ;;  %p1732_p0 = scmp.ne.s32.totalorder %s1369_s4, %s1731_s5  ;;  %p1737_p2 = scmp.lt.s32.totalorder %s1731_s5, %s1731_s5 }
   0xe   :  { %1536 = vmatmul.mubr.msk.f32.vlgmr.msra.gmra.mxu0 %vm31_vm0, %v13_v7  ;;  %1551 = vmatprep.subr.mxu1 %v236_v16 }
   0xf   :  { %1538 = vmatprep.mubr.msk.f32.mxu0 %vm31_vm0, %v14_v8  ;;  %1552 = vmatpush3.msra.mxu1 %v236_v16  ;;  %p1738_p3 = por %p1737_p2, %p1736_p1 }
  0x10   :  { %1553 = vmatprep.subr.mxu1 %v235_v17 }
  0x11   :  { %1554 = vmatpush3.msra.mxu1 %v235_v17  ;;  %p1739_p4 = pnand %p1738_p3, %p1732_p0 }
  0x12   :  { %1539 = vmatmul.mubr.msk.f32.gmra.mxu0 %vm31_vm0, %v15_v9  ;;  %1555 = vmatprep.subr.mxu1 %v234_v18 }
  0x13   :  { %1541 = vmatprep.mubr.msk.f32.mxu0 %vm31_vm0, %v16_v10  ;;  %1556 = vmatpush3.msra.mxu1 %v234_v18 }
  0x14   :  { %1557 = vmatprep.subr.mxu1 %v233_v19 }
  0x15   :  { %1558 = vmatpush3.msra.mxu1 %v233_v19 }
  0x16   :  { %1542 = vmatmul.mubr.msk.f32.gmra.mxu0 %vm31_vm0, %v17_v11 }
  0x17   :  { %1544 = vmatprep.mubr.msk.f32.mxu0 %vm31_vm0, %v18_v12 }
  0x1a   :  { %1545 = vmatmul.mubr.msk.f32.gmra.mxu0 %vm31_vm0, %v19_v13 }
  0xce   :  { %v1537_v21 = vpop.f32.mrf.mxu0 }
  0xcf   :  { %v1847_v22 = vadd.f32 %v1537_v21, %v1376_v20 }
  0xd0   :  { %v122_v23 = vpop.f32.mrf.mxu0 }
  0xd1   :  { %v170_v24 = vmul.f32 0.044715, %v1847_v22  ;;  %v123_v25 = vadd.f32 %v1376_v20, %v122_v23  ;;  %v162_v19 = vmul.f32 0.5, %v1847_v22 }
  0xd2   :  { %v1540_v26 = vpop.f32.mrf.mxu0 }
  0xd3   :  { %v178_v27 = vmul.f32 %v170_v24, %v1847_v22  ;;  %v169_v28 = vmul.f32 0.044715, %v123_v25  ;;  %v1851_v29 = vadd.f32 %v1540_v26, %v1376_v20  ;;  %v161_v16 = vmul.f32 0.5, %v123_v25 }
  0xd4   :  { %v132_v30 = vpop.f32.mrf.mxu0 }
  0xd5   :  { %v186_v31 = vmul.f32 %v178_v27, %v1847_v22  ;;  %v172_v32 = vmul.f32 0.044715, %v1851_v29  ;;  %v133_v33 = vadd.f32 %v1376_v20, %v132_v30  ;;  %v177_v34 = vmul.f32 %v169_v28, %v123_v25 }
  0xd6   :  { %v1543_v35 = vpop.f32.mrf.mxu0 }
  0xd7   :  { %v194_v36 = vadd.f32 %v186_v31, %v1847_v22  ;;  %v180_v37 = vmul.f32 %v172_v32, %v1851_v29  ;;  %v171_v38 = vmul.f32 0.044715, %v133_v33  ;;  %v1857_v39 = vadd.f32 %v1543_v35, %v1376_v20 }
  0xd8   :  { %v142_v40 = vpop.f32.mrf.mxu0  ;;  %v185_v41 = vmul.f32 %v177_v34, %v123_v25  ;;  %v163_v24 = vmul.f32 0.5, %v133_v33  ;;  %v164_v31 = vmul.f32 0.5, %v1851_v29 }
  0xd9   :  { %v188_v42 = vmul.f32 %v180_v37, %v1851_v29  ;;  %v179_v43 = vmul.f32 %v171_v38, %v133_v33  ;;  %v174_v44 = vmul.f32 0.044715, %v1857_v39  ;;  %v143_v45 = vadd.f32 %v1376_v20, %v142_v40 }
  0xda   :  { %v1546_v46 = vpop.f32.mrf.mxu0  ;;  %v193_v47 = vadd.f32 %v185_v41, %v123_v25  ;;  %v202_v48 = vmul.f32 0.7978846, %v194_v36  ;;  %v166_v37 = vmul.f32 0.5, %v1857_v39 }
  0xdb   :  { %v196_v49 = vadd.f32 %v188_v42, %v1851_v29  ;;  %v187_v50 = vmul.f32 %v179_v43, %v133_v33  ;;  %v182_v51 = vmul.f32 %v174_v44, %v1857_v39  ;;  %v173_v52 = vmul.f32 0.044715, %v143_v45 }
  0xdc   :  { %v1863_v53 = vadd.f32 %v1546_v46, %v1376_v20  ;;  %v152_v54 = vpop.f32.mrf.mxu0  ;;  %v201_v55 = vmul.f32 0.7978846, %v193_v47  ;;  %1711 = vtanh.f32 %v202_v48  ;;  %v165_v34 = vmul.f32 0.5, %v143_v45  ;;  %v1892_v47 = vld [vmem:[%s2255_s1 + $0xe0] sm:$0xff]  ;;  %v1898_v48 = vld [vmem:[%s2255_s1 + $0xc8] sm:$0xff] }
  0xdd   :  { %v195_v56 = vadd.f32 %v187_v50, %v133_v33  ;;  %v190_v57 = vmul.f32 %v182_v51, %v1857_v39  ;;  %v181_v58 = vmul.f32 %v173_v52, %v143_v45  ;;  %v153_v59 = vadd.f32 %v1376_v20, %v152_v54  ;;  %v1910_v50 = vld [vmem:[%s2255_s1 + $0x168] sm:$0xff]  ;;  %v1916_v51 = vld [vmem:[%s2255_s1 + $0x158] sm:$0xff]  ;;  %v373_v52 = vld [vmem:[%s2255_s1 + $0x70] sm:$0xff] }
  0xde   :  { %v176_v60 = vmul.f32 0.044715, %v1863_v53  ;;  %1713 = vtanh.f32 %v201_v55  ;;  %v204_v61 = vmul.f32 0.7978846, %v196_v49  ;;  %v168_v44 = vmul.f32 0.5, %v1863_v53  ;;  %v1904_v49 = vld [vmem:[%s2255_s1 + $0xb8] sm:$0xff]  ;;  %1587 = vmatprep.mubr.msk.f32.mxu0 %vm565_vm1, %v373_v52 }
  0xdf   :  { %v198_v62 = vadd.f32 %v190_v57, %v1857_v39  ;;  %v189_v63 = vmul.f32 %v181_v58, %v143_v45  ;;  %v175_v0 = vmul.f32 0.044715, %v153_v59  ;;  %v203_v1 = vmul.f32 0.7978846, %v195_v56  ;;  %v1886_v39 = vld [vmem:[%s2255_s1 + $0xe8] sm:$0xff]  ;;  %v1930_v54 = vld [vmem:[%s2255_s1 + $0xd8] sm:$0xff] }
  0xe0   :  { %v184_v2 = vmul.f32 %v176_v60, %v1863_v53  ;;  %1715 = vtanh.f32 %v204_v61  ;;  %v167_v41 = vmul.f32 0.5, %v153_v59  ;;  %v1753_v46 = vmov 64   ;;  %v1935_v55 = vld [vmem:[%s2255_s1 + $0x148] sm:$0xff]  ;;  %v1942_v56 = vld [vmem:[%s2255_s1 + $0x140] sm:$0xff]  ;;  %v1947_v57 = vld [vmem:[%s2255_s1 + $0xd0] sm:$0xff] }
  0xe1   :  { %v197_v3 = vadd.f32 %v189_v63, %v143_v45  ;;  %v183_v4 = vmul.f32 %v175_v0, %v153_v59  ;;  %1717 = vtanh.f32 %v203_v1  ;;  %v206_v5 = vmul.f32 0.7978846, %v198_v62  ;;  %1709 = vset.pattern.permute.xlu0 %v1753_v46  ;;  %1710 = vset.pattern.permute.xlu1 %v1753_v46  ;;  %v1954_v58 = vld [vmem:[%s2255_s1 + $0x138] sm:$0xff]  ;;  %v1966_v60 = vld [vmem:[%s2255_s1 + $0xb0] sm:$0xff]  ;;  %v1977_v62 = vld [vmem:[%s2255_s1 + $0x160] sm:$0xff] }
  0xe2   :  { %v192_v6 = vmul.f32 %v184_v2, %v1863_v53  ;;  %482 = vperm.xlu0 %1709, %v1886_v39   ;;  %472 = vperm.xlu1 %1710, %v1930_v54   ;;  %v1972_v61 = vld [vmem:[%s2255_s1 + $0x90] sm:$0xff]  ;;  %v1989_v0 = vld [vmem:[%s2255_s1 + $0xa0] sm:$0xff]  ;;  %v2002_v2 = vld [vmem:[%s2255_s1 + $0x78] sm:$0xff] }
  0xe3   :  { %v191_v7 = vmul.f32 %v183_v4, %v153_v59  ;;  %v205_v8 = vmul.f32 0.7978846, %v197_v3  ;;  %1719 = vtanh.f32 %v206_v5  ;;  %v1984_v63 = vld [vmem:[%s2255_s1 + $0x150] sm:$0xff]  ;;  %v2007_v3 = vld [vmem:[%s2255_s1 + $0x100] sm:$0xff] }
  0xe4   :  { %v200_v9 = vadd.f32 %v192_v6, %v1863_v53  ;;  %v397_v53 = vld [vmem:[%s2255_s1 + $0x130] sm:$0xff]  ;;  %v2014_v4 = vld [vmem:[%s2255_s1 + $0x80] sm:$0xff]  ;;  %v2026_v6 = vld [vmem:[%s2255_s1 + $0x88] sm:$0xff] }
  0xe5   :  { %v199_v10 = vadd.f32 %v191_v7, %v153_v59  ;;  %1721 = vtanh.f32 %v205_v8  ;;  %v1959_v59 = vld [vmem:[%s2255_s1 + $0xc0] sm:$0xff]  ;;  %v1996_v1 = vld [vmem:[%s2255_s1 + $0xf0] sm:$0xff]  ;;  %v2038_v8 = vld [vmem:[%s2255_s1 + $0x98] sm:$0xff] }
  0xe6   :  { %v208_v11 = vmul.f32 0.7978846, %v200_v9  ;;  %477 = vperm.xlu0 %1709, %v1892_v47   ;;  %467 = vperm.xlu1 %1710, %v1947_v57   ;;  %v2019_v5 = vld [vmem:[%s2255_s1 + $0x110] sm:$0xff]  ;;  %v2031_v7 = vld [vmem:[%s2255_s1 + $0x120] sm:$0xff]  ;;  %v2044_v9 = vld [vmem:[%s2255_s1 + $0xa8] sm:$0xff] }
  0xe7   :  { %v207_v12 = vmul.f32 0.7978846, %v199_v10  ;;  %v2050_v10 = vld [vmem:[%s2255_s1 + $0xf8] sm:$0xff] }
  0xe8   :  { %1723 = vtanh.f32 %v208_v11  ;;  %v2056_v11 = vld [vmem:[%s2255_s1 + $0x108] sm:$0xff] }
  0xe9   :  { %v1712_v13 = vpop.eup %1711  ;;  %1725 = vtanh.f32 %v207_v12  ;;  %v2062_v12 = vld [vmem:[%s2255_s1 + $0x118] sm:$0xff] }
  0xea   :  { %v218_v15 = vadd.f32 1.0, %v1712_v13  ;;  %462 = vperm.xlu0 %1709, %v1898_v48   ;;  %457 = vperm.xlu1 %1710, %v1959_v59   ;;  %v2068_v13 = vld [vmem:[%s2255_s1 + $0x128] sm:$0xff] }
  0xeb   :  { %v1714_v14 = vpop.eup %1713 }
  0xec   :  { %v217_v17 = vadd.f32 1.0, %v1714_v14  ;;  %v226_v23 = vmul.f32 %v218_v15, %v162_v19 }
  0xed   :  { %v1716_v18 = vpop.eup %1715 }
  0xee   :  { %v1718_v20 = vpop.eup %1717  ;;  %v225_v21 = vmul.f32 %v217_v17, %v161_v16  ;;  %v220_v27 = vadd.f32 1.0, %v1716_v18  ;;  %452 = vperm.xlu0 %1709, %v1904_v49   ;;  %447 = vperm.xlu1 %1710, %v1966_v60  }
  0xef   :  { %v219_v26 = vadd.f32 1.0, %v1718_v20  ;;  %v1385_v20 = vld [vmem:[%s2255_s1 + $0x68] ss:$0 sm:$0xff] }
  0xf0   :  { %v1720_v28 = vpop.eup %1719  ;;  %1559 = vmatprep.mubr.msk.f32.mxu1 %vm31_vm0, %v225_v21  ;;  %v228_v25 = vmul.f32 %v220_v27, %v164_v31 }
  0xf1   :  { %1560 = vmatmul.mubr.msk.f32.vlgmr.msra.gmra.mxu1 %vm31_vm0, %v226_v23  ;;  %v227_v30 = vmul.f32 %v219_v26, %v163_v24  ;;  %v222_v35 = vadd.f32 1.0, %v1720_v28 }
  0xf2   :  { %v1722_v32 = vpop.eup %1721  ;;  %562 = vperm.xlu0 %1709, %v1910_v50   ;;  %557 = vperm.xlu1 %1710, %v1977_v62  }
  0xf3   :  { %1562 = vmatprep.mubr.msk.f32.mxu1 %vm31_vm0, %v227_v30  ;;  %v221_v22 = vadd.f32 1.0, %v1722_v32  ;;  %v230_v40 = vmul.f32 %v222_v35, %v166_v37 }
  0xf5   :  { %v1724_v36 = vpop.eup %1723  ;;  %1563 = vmatmul.mubr.msk.f32.gmra.mxu1 %vm31_vm0, %v228_v25  ;;  %v229_v33 = vmul.f32 %v221_v22, %v165_v34 }
  0xf6   :  { %v1726_v38 = vpop.eup %1725  ;;  %v224_v29 = vadd.f32 1.0, %v1724_v36  ;;  %552 = vperm.xlu0 %1709, %v1916_v51   ;;  %547 = vperm.xlu1 %1710, %v1984_v63  }
  0xf7   :  { %1565 = vmatprep.mubr.msk.f32.mxu1 %vm31_vm0, %v229_v33  ;;  %v223_v42 = vadd.f32 1.0, %v1726_v38 }
  0xf8   :  { %v232_v45 = vmul.f32 %v224_v29, %v168_v44 }
  0xf9   :  { %1566 = vmatmul.mubr.msk.f32.gmra.mxu1 %vm31_vm0, %v230_v40  ;;  %v231_v43 = vmul.f32 %v223_v42, %v167_v41 }
  0xfa   :  { %542 = vperm.xlu0 %1709, %v1935_v55   ;;  %407 = vperm.xlu1 %1710, %v373_v52  }
  0xfb   :  { %1568 = vmatprep.mubr.msk.f32.mxu1 %vm31_vm0, %v231_v43 }
  0xfd   :  { %1569 = vmatmul.mubr.msk.f32.gmra.mxu1 %vm31_vm0, %v232_v45 }
  0xfe   :  { %1623 = vmatprep.mubr.msk.f32.mxu1 %vm565_vm1, %v397_v53  ;;  %537 = vperm.xlu0 %1709, %v1942_v56  }
  0xff   :  { %412 = vperm.xlu1 %1710, %v2002_v2  }
 0x102   :  { %532 = vperm.xlu0 %1709, %v1954_v58  }
 0x103   :  { %417 = vperm.xlu1 %1710, %v2014_v4  }
 0x106   :  { %527 = vperm.xlu0 %1709, %v397_v53  }
 0x107   :  { %422 = vperm.xlu1 %1710, %v2026_v6  }
 0x10a   :  { %427 = vperm.xlu0 %1709, %v1972_v61  }
 0x10b   :  { %432 = vperm.xlu1 %1710, %v2038_v8  }
 0x10e   :  { %437 = vperm.xlu0 %1709, %v1989_v0  }
 0x10f   :  { %442 = vperm.xlu1 %1710, %v2044_v9  }
 0x112   :  { %487 = vperm.xlu0 %1709, %v1996_v1  }
 0x113   :  { %492 = vperm.xlu1 %1710, %v2050_v10  }
 0x116   :  { %497 = vperm.xlu0 %1709, %v2007_v3  }
 0x117   :  { %502 = vperm.xlu1 %1710, %v2056_v11  }
 0x11a   :  { %507 = vperm.xlu0 %1709, %v2019_v5  }
 0x11b   :  { %512 = vperm.xlu1 %1710, %v2062_v12  }
 0x11e   :  { %517 = vperm.xlu0 %1709, %v2031_v7  }
 0x11f   :  { %522 = vperm.xlu1 %1710, %v2068_v13  }
 0x15d   :  { %v2134_v34 = vpop.permute.xlu0 %482  ;;  %v473_v38 = vpop.permute.xlu1 %472 }
 0x161   :  { %v2136_v22 = vpop.permute.xlu0 %477  ;;  %v468_v41 = vpop.permute.xlu1 %467 }
 0x165   :  { %v463_v35 = vpop.permute.xlu0 %462  ;;  %v458_v29 = vpop.permute.xlu1 %457 }
 0x169   :  { %v453_v36 = vpop.permute.xlu0 %452  ;;  %v448_v44 = vpop.permute.xlu1 %447 }
 0x16d   :  { %v563_v33 = vpop.permute.xlu0 %562 }
 0x171   :  { %v553_v37 = vpop.permute.xlu0 %552 }
 0x175   :  { %v543_v40 = vpop.permute.xlu0 %542 }
 0x179   :  { %v538_v42 = vpop.permute.xlu0 %537 }
 0x17d   :  { %v533_v43 = vpop.permute.xlu0 %532 }
 0x1b1   :  { %v1561_v14 = vpop.f32.mrf.mxu1 }
 0x1b2   :  { %v340_v32 = vadd.f32 %v1561_v14, %v1385_v20 }
 0x1b3   :  { %v334_v15 = vpop.f32.mrf.mxu1 }
 0x1b4   :  { %v335_v25 = vadd.f32 %v1385_v20, %v334_v15 }
 0x1b5   :  { %v1564_v16 = vpop.f32.mrf.mxu1 }
 0x1b6   :  { %v350_v30 = vadd.f32 %v1564_v16, %v1385_v20 }
 0x1b7   :  { %v344_v17 = vpop.f32.mrf.mxu1 }
 0x1b8   :  { %v345_v31 = vadd.f32 %v1385_v20, %v344_v17 }
 0x1b9   :  { %v1567_v18 = vpop.f32.mrf.mxu1 }
 0x1ba   :  { %v360_v27 = vadd.f32 %v1567_v18, %v1385_v20 }
 0x1bb   :  { %v354_v19 = vpop.f32.mrf.mxu1 }
 0x1bc   :  { %v355_v28 = vadd.f32 %v1385_v20, %v354_v19 }
 0x1bd   :  { %v1570_v21 = vpop.f32.mrf.mxu1 }
 0x1be   :  { %v370_v23 = vadd.f32 %v1570_v21, %v1385_v20 }
 0x1bf   :  { %v364_v24 = vpop.f32.mrf.mxu1 }
 0x1c0   :  { %v365_v26 = vadd.f32 %v1385_v20, %v364_v24  ;;  %1571 = vmatprep.subr.mxu0 %v370_v23  ;;  %1685 = vmatprep.subr.mxu1 %v370_v23 }
 0x1c1   :  { %1572 = vmatpush3.msra.mxu0 %v370_v23  ;;  %1693 = vmatpush3.msra.mxu1 %v370_v23 }
 0x1c2   :  { %1573 = vmatprep.subr.mxu0 %v365_v26  ;;  %1686 = vmatprep.subr.mxu1 %v365_v26 }
 0x1c3   :  { %1574 = vmatpush3.msra.mxu0 %v365_v26  ;;  %1694 = vmatpush3.msra.mxu1 %v365_v26 }
 0x1c4   :  { %1575 = vmatprep.subr.mxu0 %v360_v27  ;;  %1687 = vmatprep.subr.mxu1 %v360_v27 }
 0x1c5   :  { %1576 = vmatpush3.msra.mxu0 %v360_v27  ;;  %1695 = vmatpush3.msra.mxu1 %v360_v27 }
 0x1c6   :  { %1577 = vmatprep.subr.mxu0 %v355_v28  ;;  %1688 = vmatprep.subr.mxu1 %v355_v28 }
 0x1c7   :  { %1578 = vmatpush3.msra.mxu0 %v355_v28  ;;  %1696 = vmatpush3.msra.mxu1 %v355_v28 }
 0x1c8   :  { %1579 = vmatprep.subr.mxu0 %v350_v30  ;;  %1689 = vmatprep.subr.mxu1 %v350_v30 }
 0x1c9   :  { %1580 = vmatpush3.msra.mxu0 %v350_v30  ;;  %1697 = vmatpush3.msra.mxu1 %v350_v30 }
 0x1ca   :  { %1581 = vmatprep.subr.mxu0 %v345_v31  ;;  %1690 = vmatprep.subr.mxu1 %v345_v31 }
 0x1cb   :  { %1582 = vmatpush3.msra.mxu0 %v345_v31  ;;  %1698 = vmatpush3.msra.mxu1 %v345_v31 }
 0x1cc   :  { %1583 = vmatprep.subr.mxu0 %v340_v32  ;;  %1691 = vmatprep.subr.mxu1 %v340_v32 }
 0x1cd   :  { %1584 = vmatpush3.msra.mxu0 %v340_v32  ;;  %1699 = vmatpush3.msra.mxu1 %v340_v32 }
 0x1ce   :  { %1585 = vmatprep.subr.mxu0 %v335_v25  ;;  %1692 = vmatprep.subr.mxu1 %v335_v25 }
 0x1cf   :  { %1586 = vmatpush3.msra.mxu0 %v335_v25  ;;  %1700 = vmatpush3.msra.mxu1 %v335_v25  ;;  %v855_v25 = vld [vmem:[%s2255_s1 + $0x170] sm:$0xff] }
 0x1d0   :  { %1588 = vmatmul.mubr.msk.f32.vlgmr.msra.gmra.mxu0 %vm565_vm1, %v2002_v2  ;;  %1624 = vmatmul.mubr.msk.f32.vlgmr.msra.gmra.mxu1 %vm565_vm1, %v1954_v58 }
 0x1d1   :  { %1590 = vmatprep.mubr.msk.f32.mxu0 %vm565_vm1, %v2014_v4  ;;  %1626 = vmatprep.mubr.msk.f32.mxu1 %vm565_vm1, %v1942_v56 }
 0x1d4   :  { %1591 = vmatmul.mubr.msk.f32.gmra.mxu0 %vm565_vm1, %v2026_v6  ;;  %1627 = vmatmul.mubr.msk.f32.gmra.mxu1 %vm565_vm1, %v1935_v55 }
 0x1d5   :  { %1593 = vmatprep.mubr.msk.f32.mxu0 %vm565_vm1, %v1972_v61  ;;  %1629 = vmatprep.mubr.msk.f32.mxu1 %vm565_vm1, %v1984_v63 }
 0x1d8   :  { %1594 = vmatmul.mubr.msk.f32.gmra.mxu0 %vm565_vm1, %v2038_v8  ;;  %1630 = vmatmul.mubr.msk.f32.gmra.mxu1 %vm565_vm1, %v1916_v51  ;;  %v1755_v8 = vmov 0.0  }
 0x1d9   :  { %1596 = vmatprep.mubr.msk.f32.mxu0 %vm565_vm1, %v1989_v0  ;;  %1632 = vmatprep.mubr.msk.f32.mxu1 %vm565_vm1, %v1977_v62 }
 0x1da   :  { %1635 = vmatprep.subr.mxu1 %v1755_v8 }
 0x1dc   :  { %1597 = vmatmul.mubr.msk.f32.gmra.mxu0 %vm565_vm1, %v2044_v9  ;;  %1633 = vmatmul.mubr.msk.f32.gmra.mxu1 %vm565_vm1, %v1910_v50  ;;  %v558_v50 = vpop.permute.xlu1 %557 }
 0x1dd   :  { %1599 = vmatprep.mubr.msk.f32.mxu0 %vm565_vm1, %v1966_v60  ;;  %1651 = vmatprep.mubr.msk.f32.mxu1 %vm1756_vm2, %v1755_v8 }
 0x1e0   :  { %1600 = vmatmul.mubr.msk.f32.gmra.mxu0 %vm565_vm1, %v1904_v49  ;;  %v548_v60 = vpop.permute.xlu1 %547 }
 0x1e1   :  { %1602 = vmatprep.mubr.msk.f32.mxu0 %vm565_vm1, %v1959_v59 }
 0x1e4   :  { %1603 = vmatmul.mubr.msk.f32.gmra.mxu0 %vm565_vm1, %v1898_v48  ;;  %v408_v26 = vpop.permute.xlu1 %407 }
 0x1e5   :  { %1605 = vmatprep.mubr.msk.f32.mxu0 %vm565_vm1, %v1947_v57 }
 0x1e8   :  { %1606 = vmatmul.mubr.msk.f32.gmra.mxu0 %vm565_vm1, %v1930_v54  ;;  %v413_v27 = vpop.permute.xlu1 %412 }
 0x1e9   :  { %1608 = vmatprep.mubr.msk.f32.mxu0 %vm565_vm1, %v1892_v47 }
 0x1ec   :  { %1609 = vmatmul.mubr.msk.f32.gmra.mxu0 %vm565_vm1, %v1886_v39  ;;  %v528_v39 = vpop.permute.xlu0 %527  ;;  %v418_v28 = vpop.permute.xlu1 %417 }
 0x1ed   :  { %1611 = vmatprep.mubr.msk.f32.mxu0 %vm565_vm1, %v1996_v1 }
 0x1f0   :  { %1612 = vmatmul.mubr.msk.f32.gmra.mxu0 %vm565_vm1, %v2050_v10  ;;  %v423_v30 = vpop.permute.xlu1 %422  ;;  %v428_v31 = vpop.permute.xlu0 %427 }
 0x1f1   :  { %1614 = vmatprep.mubr.msk.f32.mxu0 %vm565_vm1, %v2007_v3 }
 0x1f4   :  { %1615 = vmatmul.mubr.msk.f32.gmra.mxu0 %vm565_vm1, %v2056_v11 }
 0x1f5   :  { %1617 = vmatprep.mubr.msk.f32.mxu0 %vm565_vm1, %v2019_v5 }
 0x1f8   :  { %1618 = vmatmul.mubr.msk.f32.gmra.mxu0 %vm565_vm1, %v2062_v12 }
 0x1f9   :  { %1620 = vmatprep.mubr.msk.f32.mxu0 %vm565_vm1, %v2031_v7 }
 0x1fc   :  { %1621 = vmatmul.mubr.msk.f32.gmra.mxu0 %vm565_vm1, %v2068_v13 }
 0x290   :  { %v2138_v45 = vpop.f32.mrf.mxu0  ;;  %v1625_v46 = vpop.f32.mrf.mxu1 }
 0x291   :  { %v822_v47 = vadd.f32 %v1625_v46, %v533_v43  ;;  %v858_v46 = vld [vmem:[%s2255_s1 + $0x188] sm:$0xff] }
 0x292   :  { %v2140_v48 = vpop.f32.mrf.mxu0  ;;  %v816_v49 = vpop.f32.mrf.mxu1 }
 0x293   :  { %v817_v51 = vadd.f32 %v816_v49, %v528_v39  ;;  %1082 = vrot.lane.b32.xlu0 %v822_v47, %s1754_s30  ;;  %v697_v32 = vadd.f32 %v2140_v48, %v408_v26 }
 0x294   :  { %v2143_v52 = vpop.f32.mrf.mxu0  ;;  %v1628_v53 = vpop.f32.mrf.mxu1 }
 0x295   :  { %v832_v54 = vadd.f32 %v1628_v53, %v543_v40  ;;  %1080 = vrot.lane.b32.xlu1 %v817_v51, %s1754_s30  ;;  %v859_v51 = vld [vmem:[%s2255_s1 + $0x190] sm:$0xff] }
 0x296   :  { %v2146_v55 = vpop.f32.mrf.mxu0  ;;  %v826_v56 = vpop.f32.mrf.mxu1 }
 0x297   :  { %v827_v57 = vadd.f32 %v826_v56, %v538_v42  ;;  %1086 = vrot.lane.b32.xlu0 %v832_v54, %s1754_s30  ;;  %v707_v40 = vadd.f32 %v2146_v55, %v418_v28 }
 0x298   :  { %v2149_v58 = vpop.f32.mrf.mxu0  ;;  %v1631_v59 = vpop.f32.mrf.mxu1 }
 0x299   :  { %v842_v61 = vadd.f32 %v1631_v59, %v553_v37  ;;  %1084 = vrot.lane.b32.xlu1 %v827_v57, %s1754_s30  ;;  %v860_v59 = vld [vmem:[%s2255_s1 + $0x198] sm:$0xff] }
 0x29a   :  { %v2152_v62 = vpop.f32.mrf.mxu0  ;;  %v836_v63 = vpop.f32.mrf.mxu1 }
 0x29b   :  { %v837_v0 = vadd.f32 %v836_v63, %v548_v60  ;;  %1090 = vrot.lane.b32.xlu0 %v842_v61, %s1754_s30 }
 0x29c   :  { %v2155_v1 = vpop.f32.mrf.mxu0  ;;  %v1634_v2 = vpop.f32.mrf.mxu1 }
 0x29d   :  { %v852_v3 = vadd.f32 %v1634_v2, %v563_v33  ;;  %1088 = vrot.lane.b32.xlu1 %v837_v0, %s1754_s30  ;;  %v438_v33 = vpop.permute.xlu0 %437 }
 0x29e   :  { %v2158_v4 = vpop.f32.mrf.mxu0  ;;  %v846_v5 = vpop.f32.mrf.mxu1 }
 0x29f   :  { %v847_v6 = vadd.f32 %v846_v5, %v558_v50  ;;  %1094 = vrot.lane.b32.xlu0 %v852_v3, %s1754_s30  ;;  %v717_v50 = vadd.f32 %v2152_v62, %v428_v31  ;;  %v727_v2 = vadd.f32 %v2158_v4, %v438_v33  ;;  %v861_v3 = vld [vmem:[%s2255_s1 + $0x1a0] sm:$0xff] }
 0x2a0   :  { %v1601_v7 = vpop.f32.mrf.mxu0 }
 0x2a1   :  { %v742_v9 = vadd.f32 %v1601_v7, %v453_v36  ;;  %1092 = vrot.lane.b32.xlu1 %v847_v6, %s1754_s30  ;;  %v856_v36 = vld [vmem:[%s2255_s1 + $0x178] sm:$0xff]  ;;  %v488_v43 = vpop.permute.xlu0 %487  ;;  %v872_v57 = vmul.f32 %v859_v51, %v717_v50 }
 0x2a2   :  { %v736_v10 = vpop.f32.mrf.mxu0 }
 0x2a3   :  { %v737_v11 = vadd.f32 %v736_v10, %v448_v44  ;;  %918 = vrot.lane.b32.xlu0 %v742_v9, %s1754_s30  ;;  %v712_v44 = vadd.f32 %v2143_v52, %v423_v30  ;;  %v874_v10 = vmul.f32 %v861_v3, %v727_v2 }
 0x2a4   :  { %v1604_v12 = vpop.f32.mrf.mxu0 }
 0x2a5   :  { %v752_v13 = vadd.f32 %v1604_v12, %v463_v35  ;;  %916 = vrot.lane.b32.xlu1 %v737_v11, %s1754_s30  ;;  %v868_v35 = vmul.f32 %v855_v25, %v697_v32  ;;  %v871_v49 = vmul.f32 %v858_v46, %v712_v44  ;;  %v498_v52 = vpop.permute.xlu0 %497  ;;  %v862_v11 = vld [vmem:[%s2255_s1 + $0x1a8] sm:$0xff] }
 0x2a6   :  { %v746_v14 = vpop.f32.mrf.mxu0 }
 0x2a7   :  { %v747_v15 = vadd.f32 %v746_v14, %v458_v29  ;;  %922 = vrot.lane.b32.xlu0 %v752_v13, %s1754_s30 }
 0x2a8   :  { %v1607_v16 = vpop.f32.mrf.mxu0 }
 0x2a9   :  { %v762_v17 = vadd.f32 %v1607_v16, %v473_v38  ;;  %920 = vrot.lane.b32.xlu1 %v747_v15, %s1754_s30  ;;  %v508_v7 = vpop.permute.xlu0 %507 }
 0x2aa   :  { %v756_v18 = vpop.f32.mrf.mxu0 }
 0x2ab   :  { %v757_v19 = vadd.f32 %v756_v18, %v468_v41  ;;  %926 = vrot.lane.b32.xlu0 %v762_v17, %s1754_s30  ;;  %v857_v41 = vld [vmem:[%s2255_s1 + $0x180] sm:$0xff] }
 0x2ac   :  { %v1610_v20 = vpop.f32.mrf.mxu0 }
 0x2ad   :  { %v772_v21 = vadd.f32 %v1610_v20, %v2134_v34  ;;  %924 = vrot.lane.b32.xlu1 %v757_v19, %s1754_s30  ;;  %v433_v34 = vpop.permute.xlu1 %432  ;;  %v518_v19 = vpop.permute.xlu0 %517 }
 0x2ae   :  { %v766_v23 = vpop.f32.mrf.mxu0  ;;  %v722_v56 = vadd.f32 %v2149_v58, %v433_v34 }
 0x2af   :  { %v767_v24 = vadd.f32 %v766_v23, %v2136_v22  ;;  %930 = vrot.lane.b32.xlu0 %v772_v21, %s1754_s30  ;;  %v702_v22 = vadd.f32 %v2138_v45, %v413_v27  ;;  %v870_v45 = vmul.f32 %v857_v41, %v707_v40 }
 0x2b0   :  { %v1613_v37 = vpop.f32.mrf.mxu0  ;;  %v873_v0 = vmul.f32 %v860_v59, %v722_v56 }
 0x2b1   :  { %928 = vrot.lane.b32.xlu1 %v767_v24, %s1754_s30  ;;  %v869_v38 = vmul.f32 %v856_v36, %v702_v22  ;;  %v443_v42 = vpop.permute.xlu1 %442 }
 0x2b2   :  { %v776_v29 = vpop.f32.mrf.mxu0  ;;  %v732_v9 = vadd.f32 %v2155_v1, %v443_v42 }
 0x2b3   :  { %v777_v39 = vadd.f32 %v776_v29, %v488_v43 }
 0x2b4   :  { %v1616_v47 = vpop.f32.mrf.mxu0  ;;  %v875_v15 = vmul.f32 %v862_v11, %v732_v9  ;;  %v1428_v9 = vld [vmem:[%s2255_s1 + $0x1c0] ss:$0 sm:$0xff] }
 0x2b5   :  { %v493_v48 = vpop.permute.xlu1 %492  ;;  %v1032_v54 = vmul.f32 %v855_v25, %v777_v39  ;;  %v864_v39 = vld [vmem:[%s2255_s1 + $0x1b8] sm:$0xff] }
 0x2b6   :  { %v782_v53 = vadd.f32 %v1613_v37, %v493_v48  ;;  %v786_v55 = vpop.f32.mrf.mxu0 }
 0x2b7   :  { %v787_v61 = vadd.f32 %v786_v55, %v498_v52 }
 0x2b8   :  { %v1033_v60 = vmul.f32 %v856_v36, %v782_v53  ;;  %v1619_v62 = vpop.f32.mrf.mxu0 }
 0x2b9   :  { %v503_v63 = vpop.permute.xlu1 %502  ;;  %v1034_v58 = vmul.f32 %v857_v41, %v787_v61 }
 0x2ba   :  { %v792_v5 = vadd.f32 %v1616_v47, %v503_v63  ;;  %v796_v6 = vpop.f32.mrf.mxu0  ;;  %v863_v47 = vld [vmem:[%s2255_s1 + $0x1b0] sm:$0xff] }
 0x2bb   :  { %v797_v13 = vadd.f32 %v796_v6, %v508_v7  ;;  %v866_v7 = vld [vmem:[%s2255_s1 + $0x1c8] sm:$0xff] }
 0x2bc   :  { %v1035_v12 = vmul.f32 %v858_v46, %v792_v5  ;;  %v1622_v4 = vpop.f32.mrf.mxu0 }
 0x2bd   :  { %v513_v14 = vpop.permute.xlu1 %512  ;;  %v1036_v17 = vmul.f32 %v859_v51, %v797_v13 }
 0x2be   :  { %v802_v16 = vadd.f32 %v1619_v62, %v513_v14  ;;  %v806_v18 = vpop.f32.mrf.mxu0 }
 0x2bf   :  { %v807_v1 = vadd.f32 %v806_v18, %v518_v19 }
 0x2c0   :  { %v1037_v20 = vmul.f32 %v860_v59, %v802_v16 }
 0x2c1   :  { %v523_v21 = vpop.permute.xlu1 %522  ;;  %v1038_v24 = vmul.f32 %v861_v3, %v807_v1 }
 0x2c2   :  { %v812_v23 = vadd.f32 %v1622_v4, %v523_v21  ;;  %v1430_v4 = vld [vmem:[%s2255_s1 + $0x1d0] ss:$0 sm:$0xff] }
 0x2c4   :  { %v1039_v26 = vmul.f32 %v862_v11, %v812_v23 }
 0x2cd   :  { %876 = vxpose.xlu0.b32.start [1/8] (short) (narrow) %v868_v35, 8 }
 0x2d1   :  { %877 = vxpose.xlu0.b32.cont [2/8] (short) (narrow) %v869_v38, 8 }
 0x2d5   :  { %878 = vxpose.xlu0.b32.cont [3/8] (short) (narrow) %v870_v45, 8 }
 0x2d9   :  { %879 = vxpose.xlu0.b32.cont [4/8] (short) (narrow) %v871_v49, 8 }
 0x2da   :  { %1040 = vxpose.xlu1.b32.start [1/8] (short) (narrow) %v1032_v54, 8 }
 0x2dd   :  { %880 = vxpose.xlu0.b32.cont [5/8] (short) (narrow) %v872_v57, 8 }
 0x2de   :  { %1041 = vxpose.xlu1.b32.cont [2/8] (short) (narrow) %v1033_v60, 8 }
 0x2e1   :  { %881 = vxpose.xlu0.b32.cont [6/8] (short) (narrow) %v873_v0, 8 }
 0x2e2   :  { %1042 = vxpose.xlu1.b32.cont [3/8] (short) (narrow) %v1034_v58, 8 }
 0x2e5   :  { %882 = vxpose.xlu0.b32.cont [7/8] (short) (narrow) %v874_v10, 8 }
 0x2e6   :  { %1043 = vxpose.xlu1.b32.cont [4/8] (short) (narrow) %v1035_v12, 8 }
 0x2e9   :  { %883 = vxpose.xlu0.b32.end [8/8] (short) (narrow) %v875_v15, 8 }
 0x2ea   :  { %1044 = vxpose.xlu1.b32.cont [5/8] (short) (narrow) %v1036_v17, 8 }
 0x2ee   :  { %1045 = vxpose.xlu1.b32.cont [6/8] (short) (narrow) %v1037_v20, 8 }
 0x2f2   :  { %1046 = vxpose.xlu1.b32.cont [7/8] (short) (narrow) %v1038_v24, 8 }
 0x2f6   :  { %1047 = vxpose.xlu1.b32.end [8/8] (short) (narrow) %v1039_v26, 8 }
 0x305   :  { %v1083_v27 = vpop.permute.xlu0 %1082 }
 0x307   :  { %v1081_v28 = vpop.permute.xlu1 %1080 }
 0x309   :  { %v1087_v30 = vpop.permute.xlu0 %1086 }
 0x30b   :  { %v1085_v31 = vpop.permute.xlu1 %1084 }
 0x30d   :  { %v1091_v32 = vpop.permute.xlu0 %1090 }
 0x30f   :  { %v1089_v25 = vpop.permute.xlu1 %1088 }
 0x311   :  { %v1095_v34 = vpop.permute.xlu0 %1094 }
 0x313   :  { %v1093_v22 = vpop.permute.xlu1 %1092 }
 0x315   :  { %v919_v35 = vpop.permute.xlu0 %918 }
 0x317   :  { %v917_v36 = vpop.permute.xlu1 %916 }
 0x319   :  { %v923_v33 = vpop.permute.xlu0 %922 }
 0x31b   :  { %v921_v37 = vpop.permute.xlu1 %920 }
 0x31d   :  { %v927_v38 = vpop.permute.xlu0 %926 }
 0x31f   :  { %v925_v40 = vpop.permute.xlu1 %924 }
 0x321   :  { %v931_v41 = vpop.permute.xlu0 %930 }
 0x322   :  { %1636 = vmatpush3.msra.mxu1 %v931_v41 }
 0x323   :  { %1637 = vmatprep.subr.mxu1 %v1755_v8  ;;  %v929_v42 = vpop.permute.xlu1 %928 }
 0x324   :  { %1638 = vmatpush3.msra.mxu1 %v929_v42 }
 0x325   :  { %1639 = vmatprep.subr.mxu1 %v1755_v8 }
 0x326   :  { %1640 = vmatpush3.msra.mxu1 %v927_v38 }
 0x327   :  { %1641 = vmatprep.subr.mxu1 %v1755_v8 }
 0x328   :  { %1642 = vmatpush3.msra.mxu1 %v925_v40 }
 0x329   :  { %1643 = vmatprep.subr.mxu1 %v1755_v8 }
 0x32a   :  { %1644 = vmatpush3.msra.mxu1 %v923_v33 }
 0x32b   :  { %1645 = vmatprep.subr.mxu1 %v1755_v8 }
 0x32c   :  { %1646 = vmatpush3.msra.mxu1 %v921_v37 }
 0x32d   :  { %1647 = vmatprep.subr.mxu1 %v1755_v8 }
 0x32e   :  { %1648 = vmatpush3.msra.mxu1 %v919_v35 }
 0x32f   :  { %1649 = vmatprep.subr.mxu1 %v1755_v8 }
 0x330   :  { %1650 = vmatpush3.msra.mxu1 %v917_v36 }
 0x331   :  { %1654 = vmatprep.subr.mxu1 %v1755_v8 }
 0x349   :  { %v892_v29 = vpop.trf.xlu0 }
 0x34a   :  { %1652 = vmatmul.mubr.msk.f32.vlgmr.msra.gmra.mxu1 %vm565_vm1, %v892_v29 }
 0x34b   :  { %1655 = vmatpush3.msra.mxu1 %v1095_v34  ;;  %1670 = vmatprep.mubr.msk.f32.mxu1 %vm1756_vm2, %v1755_v8 }
 0x34c   :  { %1656 = vmatprep.subr.mxu1 %v1755_v8 }
 0x34d   :  { %1657 = vmatpush3.msra.mxu1 %v1093_v22 }
 0x34e   :  { %1658 = vmatprep.subr.mxu1 %v1755_v8 }
 0x34f   :  { %1659 = vmatpush3.msra.mxu1 %v1091_v32 }
 0x350   :  { %1660 = vmatprep.subr.mxu1 %v1755_v8 }
 0x351   :  { %1661 = vmatpush3.msra.mxu1 %v1089_v25 }
 0x352   :  { %1662 = vmatprep.subr.mxu1 %v1755_v8 }
 0x353   :  { %1663 = vmatpush3.msra.mxu1 %v1087_v30 }
 0x354   :  { %1664 = vmatprep.subr.mxu1 %v1755_v8 }
 0x355   :  { %1665 = vmatpush3.msra.mxu1 %v1085_v31 }
 0x356   :  { %1666 = vmatprep.subr.mxu1 %v1755_v8  ;;  %v1056_v43 = vpop.trf.xlu1 }
 0x357   :  { %1667 = vmatpush3.msra.mxu1 %v1083_v27 }
 0x358   :  { %1668 = vmatprep.subr.mxu1 %v1755_v8 }
 0x359   :  { %1669 = vmatpush3.msra.mxu1 %v1081_v28 }
 0x35a   :  { %1671 = vmatmul.mubr.msk.f32.vlgmr.msra.gmra.mxu1 %vm565_vm1, %v1056_v43  ;;  %1673 = vmatprep.subr.mxu1 %v1755_v8 }
 0x35b   :  { %1677 = vmatprep.mubr.msk.f32.mxu1 %vm1756_vm2, %v1755_v8  ;;  %1674 = vmatpush3.msra.mxu1 %v864_v39 }
 0x35c   :  { %1675 = vmatprep.subr.mxu1 %v1755_v8 }
 0x35d   :  { %1676 = vmatpush3.msra.mxu1 %v863_v47 }
 0x35e   :  { %1680 = vmatprep.subr.mxu1 %v1755_v8 }
 0x40a   :  { %v1009_v44 = vpop.f32.mrf.mxu1 }
 0x40b   :  { %v1014_v45 = vrot.slane %v1009_v44, 1  ;;  %v1018_v54 = vrot.slane %v1009_v44, 2  ;;  %v1022_v55 = vrot.slane %v1009_v44, 3 }
 0x40c   :  { %v1653_v46 = vpop.f32.mrf.mxu1 }
 0x40d   :  { %1015 = vrot.lane.b32.xlu0 %v1014_v45, %s1757_s18 }
 0x41a   :  { %v1173_v48 = vpop.f32.mrf.mxu1 }
 0x41b   :  { %v1182_v49 = vrot.slane %v1173_v48, 2  ;;  %v1178_v50 = vrot.slane %v1173_v48, 1  ;;  %v1186_v53 = vrot.slane %v1173_v48, 3 }
 0x41c   :  { %v1672_v51 = vpop.f32.mrf.mxu1 }
 0x41d   :  { %1183 = vrot.lane.b32.xlu1 %v1182_v49, %s1758_s23  ;;  %1179 = vrot.lane.b32.xlu0 %v1178_v50, %s1757_s18 }
 0x421   :  { %1187 = vrot.lane.b32.xlu1 %v1186_v53, %s1759_s24  ;;  %1019 = vrot.lane.b32.xlu0 %v1018_v54, %s1758_s23 }
 0x425   :  { %1023 = vrot.lane.b32.xlu1 %v1022_v55, %s1759_s24 }
 0x47f   :  { %v1016_v52 = vpop.permute.xlu0 %1015 }
 0x480   :  { %v1027_v0 = vsel %vm1026_vm3, %v1009_v44, %v1016_v52 }
 0x48f   :  { %v1184_v56 = vpop.permute.xlu1 %1183  ;;  %v1180_v57 = vpop.permute.xlu0 %1179 }
 0x490   :  { %v1190_v59 = vsel %vm1026_vm3, %v1173_v48, %v1180_v57 }
 0x491   :  { %v1191_v61 = vsel %vm1028_vm4, %v1190_v59, %v1184_v56 }
 0x493   :  { %v1188_v60 = vpop.permute.xlu1 %1187  ;;  %v1020_v63 = vpop.permute.xlu0 %1019 }
 0x494   :  { %v1192_v62 = vsel %vm1030_vm5, %v1191_v61, %v1188_v60  ;;  %v1029_v3 = vsel %vm1028_vm4, %v1027_v0, %v1020_v63 }
 0x495   :  { %v1194_v2 = vrot.slane %v1192_v62, 7 }
 0x497   :  { %v1024_v5 = vpop.permute.xlu1 %1023 }
 0x498   :  { %v1031_v58 = vsel %vm1030_vm5, %v1029_v3, %v1024_v5 }
 0x499   :  { %v1197_v6 = vsel %vm1196_vm6, %v1031_v58, %v1194_v2 }
 0x49a   :  { %1678 = vmatmul.mubr.msk.f32.vlgmr.msra.gmra.mxu1 %vm1202_vm7, %v1197_v6 }
 0x49b   :  { %1682 = vmatprep.mubr.msk.f32.mxu1 %vm1756_vm2, %v1755_v8  ;;  %1681 = vmatpush3.msra.mxu1 %v866_v7 }
 0x55a   :  { %v1272_v10 = vpop.f32.mrf.mxu1 }
 0x55b   :  { %v1273_v11 = vadd.f32 %v1428_v9, %v1272_v10 }
 0x55c   :  { %v1679_v12 = vpop.f32.mrf.mxu1 }
 0x55d   :  { %v1276_v13 = vmax.f32 %v1273_v11, 0.0 }
 0x55f   :  { %1683 = vmatmul.mubr.msk.f32.vlgmr.msra.gmra.mxu1 %vm1028_vm4, %v1276_v13 }
 0x61f   :  { %v1350_v8 = vpop.f32.mrf.mxu1 }
 0x620   :  { %v1351_v14 = vadd.f32 %v1430_v4, %v1350_v8 }
 0x621   :  { %v1684_v15 = vpop.f32.mrf.mxu1 }
 0x622   :  { %v1354_v16 = vsub.f32 0.0, %v1351_v14 }
 0x624   :  { %v1355_v17 = vmul.f32 1.442695, %v1354_v16 }
 0x626   :  { %1727 = vpow2.f32 %v1355_v17 }
 0x633   :  { %v1728_v18 = vpop.eup %1727 }
 0x634   :  { %v1357_v19 = vadd.f32 1.0, %v1728_v18 }
 0x636   :  { %1729 = vrcp.f32 %v1357_v19 }
 0x643   :  { %v1730_v20 = vpop.eup %1729 }
 0x644   :  { %1361 = vst.msk [vmem:[#allocation2] sm:$0x3] %vm1360_vm8, %v1730_v20 }
 0x645   :  { %1742 = shalt.err (!%p1739_p4)
}
 0x646   :  { %1371 = dma.vmem_to_hbm [thread:$0]  %s1369_s4, 32, %s2256_s2, [#allocation3]  }
 0x647   :  { %1751 = dma.done.wait [#allocation3], 32  }
 0x648   :  { %1752 = vsyncadd [#allocation3], 4294967264 }
 0x649   :  { %1375 = vsyncpa [#allocation3], 1 }

</bundles_post_ra>
